<compile_context>
chip_gen: v7x
topology: tpu7x:2x2x1
jax: 0.10.0
libtpu: 0.0.40
codegen_flags: <defaults>
</compile_context>

<pallas_src>
import jax
import jax.numpy as jnp
from jax.experimental import pallas as pl
from jax.experimental.pallas import tpu as pltpu

_LANE = 128
_SUB_ROWS = 128          # strip-mine chunk (rows) inside the dense kernel
_SUB_LANES = 128 * 128   # strip-mine chunk (lanes) inside the flat (ragged-K) kernel
_MAX_TILE_ROWS = 512     # 512x128 per channel per array -> v5e scoped-VMEM friendly


def _cores_per_chip():
    """2 on v7x (two TensorCores share 'parallel' grid axes), else 1."""
    try:
        kind = jax.devices()[0].device_kind.lower()
    except Exception:
        return 1
    return 2 if ("v7" in kind or "tpu7" in kind) else 1


def _static_chunks(total, chunk):
    """Static (start, size) chunks covering [0, total)."""
    out, start = [], 0
    while start < total:
        n = min(chunk, total - start)
        out.append((start, n))
        start += n
    return tuple(out)


def _project_clip_channels(px, py, pz, ox, oy, oz, nx, ny, nz, budget):
    """Shape-agnostic per-channel compute (works on (rows,128) or (1,lanes) slabs)."""
    dx, dy, dz = px - ox, py - oy, pz - oz

    # inner_diff_normal = sum(diff * normal, dim=1)
    inner = dx * nx + dy * ny + dz * nz
    inner_mask = inner < 0.0

    # vng = cross(normal, diff) -- direct cross (numerically safe near-parallel case).
    vngx = ny * dz - nz * dy
    vngy = nz * dx - nx * dz
    vngz = nx * dy - ny * dx
    vng_sq = vngx * vngx + vngy * vngy + vngz * vngz       # == vng_norm ** 2

    # vref = cross(vng, normal) = diff*|n|^2 - normal*(diff.n)   (triple product)
    # |vref| = |vng| * |n|  since vng ⟂ normal  -> one sqrt, no second cross product.
    n2 = nx * nx + ny * ny + nz * nz
    vrefx = dx * n2 - nx * inner
    vrefy = dy * n2 - ny * inner
    vrefz = dz * n2 - nz * inner
    vref_norm = jnp.sqrt(vng_sq * n2)

    # 1 / (|vref| + 1e-9): approx EUP reciprocal + one Newton step (f32-accurate),
    # then three cheap multiplies instead of three divides.
    denom = vref_norm + 1e-9
    r = pl.reciprocal(denom, approx=True)
    inv = r * (2.0 - denom * r)

    dpx = dx * vrefx * inv
    dpy = dy * vrefy * inv
    dpz = dz * vrefz * inv

    # Inner points whose diff is (anti)parallel to the normal -> zero projection.
    # vng_sq < 1e-12  <=>  vng_norm < 1e-6 (no sqrt needed).
    opp = inner_mask & (vng_sq < 1e-12)
    zero = jnp.zeros_like(dpx)
    dpx = jnp.where(opp, zero, dpx)
    dpy = jnp.where(opp, zero, dpy)
    dpz = jnp.where(opp, zero, dpz)

    # diff[inner_mask] = diff_proj[inner_mask]
    dx = jnp.where(inner_mask, dpx, dx)
    dy = jnp.where(inner_mask, dpy, dy)
    dz = jnp.where(inner_mask, dpz, dz)

    # Keep the reference's `pc = ori + diff; diff = pc - ori` round-trip (bit-faithful),
    # then L_inf clip and add back.
    px, py, pz = ox + dx, oy + dy, oz + dz
    dx = jnp.clip(px - ox, -budget, budget)
    dy = jnp.clip(py - oy, -budget, budget)
    dz = jnp.clip(pz - oz, -budget, budget)
    return ox + dx, oy + dy, oz + dz


def _clip_channels(px, py, pz, ox, oy, oz, budget):
    return (ox + jnp.clip(px - ox, -budget, budget),
            oy + jnp.clip(py - oy, -budget, budget),
            oz + jnp.clip(pz - oz, -budget, budget))


def _make_kernel(*, budget, extent, chunk, with_normal, dense):
    """Build a kernel body.

    dense=True : refs are (1, 3, ts, 128); channel slabs are dense (rows, 128).
    dense=False: refs are (1, 3, tk);       channel slabs are (1, lanes).
    The work is strip-mined into `chunk`-sized pieces so temporaries stay small.
    """
    chunks = _static_chunks(extent, chunk)

    def load3(ref, sl):
        if dense:
            return ref[0, 0, sl], ref[0, 1, sl], ref[0, 2, sl]
        return (ref[0, pl.ds(0, 1), sl],
                ref[0, pl.ds(1, 1), sl],
                ref[0, pl.ds(2, 1), sl])

    def store3(ref, sl, vx, vy, vz):
        if dense:
            ref[0, 0, sl] = vx
            ref[0, 1, sl] = vy
            ref[0, 2, sl] = vz
        else:
            ref[0, pl.ds(0, 1), sl] = vx
            ref[0, pl.ds(1, 1), sl] = vy
            ref[0, pl.ds(2, 1), sl] = vz

    def body(pc_ref, ori_ref, nrm_ref, out_ref):
        for s0, n in chunks:
            sl = pl.ds(s0, n)
            p = load3(pc_ref, sl)
            o = load3(ori_ref, sl)
            if with_normal:
                nv = load3(nrm_ref, sl)
                outs = _project_clip_channels(*p, *o, *nv, budget)
            else:
                outs = _clip_channels(*p, *o, budget)
            store3(out_ref, sl, *outs)

    if with_normal:
        def kernel(pc_ref, ori_ref, nrm_ref, out_ref):
            body(pc_ref, ori_ref, nrm_ref, out_ref)
    else:
        def kernel(pc_ref, ori_ref, out_ref):
            body(pc_ref, ori_ref, None, out_ref)
    return kernel


def _dense_tiling(B, R, max_tile_rows, cores):
    ts = R if R <= max_tile_rows else max_tile_rows     # ts == R or ts % 8 == 0
    grid_k = pl.cdiv(R, ts)
    if cores > 1:
        # v7x: make the number of 'parallel' steps a multiple of the core count.
        for _ in range(3):
            if (B * grid_k) % cores == 0:
                break
            half = ts // 2
            if half < 8 or half % 8 != 0:
                break
            ts = half
            grid_k = pl.cdiv(R, ts)
    return ts, grid_k


def _flat_tiling(B, K, max_tile_rows, cores):
    max_tk = max_tile_rows * _LANE
    tk = K if K <= max_tk else max_tk                    # tk == K or tk % 128 == 0
    grid_k = pl.cdiv(K, tk)
    if cores > 1:
        for _ in range(3):
            if (B * grid_k) % cores == 0:
                break
            half = tk // 2
            if half < _LANE or half % _LANE != 0:
                break
            tk = half
            grid_k = pl.cdiv(K, tk)
    return tk, grid_k


def project_inner_clip_linf(pc, ori_pc, normal=None, *, budget,
                            max_tile_rows=_MAX_TILE_ROWS, donate_pc=False):
    """JAX/Pallas equivalent of ProjectInnerClipLinf.forward.

    Args:
      pc:        f32[B, 3, K] perturbed point cloud
      ori_pc:    f32[B, 3, K] original point cloud
      normal:    optional f32[B, 3, K] per-point normals (None -> clip only)
      budget:    float, L_inf budget
      donate_pc: set True only if the caller donates `pc` (enables output aliasing).
    Returns:
      f32[B, 3, K]
    """
    B, C, K = pc.shape
    assert C == 3
    budget = float(budget)
    with_normal = normal is not None
    cores = _cores_per_chip()

    cparams = pltpu.CompilerParams(
        dimension_semantics=("parallel", "parallel"),
        vmem_limit_bytes=32 * 1024 * 1024)

    if K % _LANE == 0:
        # Dense path: free contiguous reshape to [B, 3, R, 128] -> (rows, 128) slabs.
        R = K // _LANE
        ts, grid_k = _dense_tiling(B, R, max_tile_rows, cores)
        spec = pl.BlockSpec((1, 3, ts, _LANE), lambda b, k: (b, 0, k, 0))
        ops = [pc.reshape(B, 3, R, _LANE), ori_pc.reshape(B, 3, R, _LANE)]
        if with_normal:
            ops.append(normal.reshape(B, 3, R, _LANE))
        out_shape = jax.ShapeDtypeStruct((B, 3, R, _LANE), pc.dtype)
        kernel = _make_kernel(budget=budget, extent=ts, chunk=min(_SUB_ROWS, ts),
                              with_normal=with_normal, dense=True)
    else:
        # Ragged-K path: operate on the original [B, 3, K] buffers, no pad / slice.
        tk, grid_k = _flat_tiling(B, K, max_tile_rows, cores)
        spec = pl.BlockSpec((1, 3, tk), lambda b, k: (b, 0, k))
        ops = [pc, ori_pc] + ([normal] if with_normal else [])
        out_shape = jax.ShapeDtypeStruct((B, 3, K), pc.dtype)
        kernel = _make_kernel(budget=budget, extent=tk, chunk=min(_SUB_LANES, tk),
                              with_normal=with_normal, dense=False)

    call_kwargs = {}
    if donate_pc:
        call_kwargs["input_output_aliases"] = {0: 0}

    out = pl.pallas_call(
        kernel,
        out_shape=out_shape,
        grid_spec=pltpu.PrefetchScalarGridSpec(
            num_scalar_prefetch=0,
            grid=(B, grid_k),
            in_specs=[spec] * len(ops),
            out_specs=spec),
        compiler_params=cparams,
        **call_kwargs,
    )(*ops)

    return out.reshape(B, 3, K)


def _reference(pc, ori_pc, normal, budget):
    """Pure-JAX reference mirroring the PyTorch module."""
    diff = pc - ori_pc
    inner = jnp.sum(diff * normal, axis=1)
    inner_mask = inner < 0.0
    vng = jnp.cross(normal, diff, axis=1)
    vng_norm = jnp.sqrt(jnp.sum(vng ** 2, axis=1))
    vref = jnp.cross(vng, normal, axis=1)
    vref_norm = jnp.sqrt(jnp.sum(vref ** 2, axis=1))
    diff_proj = diff * vref / (vref_norm[:, None, :] + 1e-9)
    opp = (inner_mask & (vng_norm < 1e-6))[:, None, :]
    diff_proj = jnp.where(opp, 0.0, diff_proj)
    diff = jnp.where(inner_mask[:, None, :], diff_proj, diff)
    pc = ori_pc + diff
    diff = jnp.clip(pc - ori_pc, -budget, budget)
    return ori_pc + diff


if __name__ == "__main__":
    budget = 0.05
    base_key = jax.random.PRNGKey(0)

    def make_inputs(B, K):
        k1, k2, k3 = jax.random.split(jax.random.fold_in(base_key, K), 3)
        ori = jax.random.normal(k1, (B, 3, K), dtype=jnp.float32)
        pc = ori + 0.1 * jax.random.normal(k2, (B, 3, K), dtype=jnp.float32)
        nrm = jax.random.normal(k3, (B, 3, K), dtype=jnp.float32)
        nrm = nrm / (jnp.linalg.norm(nrm, axis=1, keepdims=True) + 1e-12)
        return pc, ori, nrm

    # K=1000 exercises the ragged (no-pad) path, K=1024 the dense (rows,128) path.
    for K in (1000, 1024):
        pc, ori_pc, normal = make_inputs(2, K)

        out = jax.block_until_ready(
            project_inner_clip_linf(pc, ori_pc, normal, budget=budget))
        ref = _reference(pc, ori_pc, normal, budget)
        assert out.shape == (2, 3, K)
        assert jnp.allclose(out, ref, atol=1e-5, rtol=1e-5), f"mismatch (K={K})"

        out2 = jax.block_until_ready(
            project_inner_clip_linf(pc, ori_pc, None, budget=budget))
        ref2 = ori_pc + jnp.clip(pc - ori_pc, -budget, budget)
        assert out2.shape == (2, 3, K)
        assert jnp.allclose(out2, ref2, atol=1e-6), f"clip-only mismatch (K={K})"

    print("KERNEL_OK")
</pallas_src>

<mosaic_0001>
module attributes {stable_mosaic.version = 11 : i64} {
  func.func @kernel(%arg0: i32, %arg1: i32, %arg2: memref<1x3x1000xf32, #tpu.memory_space<vmem>>, %arg3: memref<1x3x1000xf32, #tpu.memory_space<vmem>>, %arg4: memref<1x3x1000xf32, #tpu.memory_space<vmem>>, %arg5: memref<1x3x1000xf32, #tpu.memory_space<vmem>>) attributes {dimension_semantics = [#tpu.dimension_semantics<parallel>, #tpu.dimension_semantics<parallel>], iteration_bounds = array<i64: 2, 1>, scalar_prefetch = 0 : i64, scratch_operands = 0 : i64, tpu.core_type = #tpu.core_type<tc>, window_params = [{transform_indices = @transform_0, window_bounds = array<i64: 1, 3, 1000>}, {transform_indices = @transform_1, window_bounds = array<i64: 1, 3, 1000>}, {transform_indices = @transform_2, window_bounds = array<i64: 1, 3, 1000>}, {transform_indices = @transform_3, window_bounds = array<i64: 1, 3, 1000>}]} {
    %c0 = arith.constant 0 : index
    %c0_0 = arith.constant 0 : index
    %c0_1 = arith.constant 0 : index
    %0 = vector.load %arg2[%c0, %c0_0, %c0_1] : memref<1x3x1000xf32, #tpu.memory_space<vmem>>, vector<1x1x1000xf32>
    %1 = vector.shape_cast %0 : vector<1x1x1000xf32> to vector<1x1000xf32>
    %c0_2 = arith.constant 0 : index
    %c1 = arith.constant 1 : index
    %c0_3 = arith.constant 0 : index
    %2 = vector.load %arg2[%c0_2, %c1, %c0_3] : memref<1x3x1000xf32, #tpu.memory_space<vmem>>, vector<1x1x1000xf32>
    %3 = vector.shape_cast %2 : vector<1x1x1000xf32> to vector<1x1000xf32>
    %c0_4 = arith.constant 0 : index
    %c2 = arith.constant 2 : index
    %c0_5 = arith.constant 0 : index
    %4 = vector.load %arg2[%c0_4, %c2, %c0_5] : memref<1x3x1000xf32, #tpu.memory_space<vmem>>, vector<1x1x1000xf32>
    %5 = vector.shape_cast %4 : vector<1x1x1000xf32> to vector<1x1000xf32>
    %c0_6 = arith.constant 0 : index
    %c0_7 = arith.constant 0 : index
    %c0_8 = arith.constant 0 : index
    %6 = vector.load %arg3[%c0_6, %c0_7, %c0_8] : memref<1x3x1000xf32, #tpu.memory_space<vmem>>, vector<1x1x1000xf32>
    %7 = vector.shape_cast %6 : vector<1x1x1000xf32> to vector<1x1000xf32>
    %c0_9 = arith.constant 0 : index
    %c1_10 = arith.constant 1 : index
    %c0_11 = arith.constant 0 : index
    %8 = vector.load %arg3[%c0_9, %c1_10, %c0_11] : memref<1x3x1000xf32, #tpu.memory_space<vmem>>, vector<1x1x1000xf32>
    %9 = vector.shape_cast %8 : vector<1x1x1000xf32> to vector<1x1000xf32>
    %c0_12 = arith.constant 0 : index
    %c2_13 = arith.constant 2 : index
    %c0_14 = arith.constant 0 : index
    %10 = vector.load %arg3[%c0_12, %c2_13, %c0_14] : memref<1x3x1000xf32, #tpu.memory_space<vmem>>, vector<1x1x1000xf32>
    %11 = vector.shape_cast %10 : vector<1x1x1000xf32> to vector<1x1000xf32>
    %c0_15 = arith.constant 0 : index
    %c0_16 = arith.constant 0 : index
    %c0_17 = arith.constant 0 : index
    %12 = vector.load %arg4[%c0_15, %c0_16, %c0_17] : memref<1x3x1000xf32, #tpu.memory_space<vmem>>, vector<1x1x1000xf32>
    %13 = vector.shape_cast %12 : vector<1x1x1000xf32> to vector<1x1000xf32>
    %c0_18 = arith.constant 0 : index
    %c1_19 = arith.constant 1 : index
    %c0_20 = arith.constant 0 : index
    %14 = vector.load %arg4[%c0_18, %c1_19, %c0_20] : memref<1x3x1000xf32, #tpu.memory_space<vmem>>, vector<1x1x1000xf32>
    %15 = vector.shape_cast %14 : vector<1x1x1000xf32> to vector<1x1000xf32>
    %c0_21 = arith.constant 0 : index
    %c2_22 = arith.constant 2 : index
    %c0_23 = arith.constant 0 : index
    %16 = vector.load %arg4[%c0_21, %c2_22, %c0_23] : memref<1x3x1000xf32, #tpu.memory_space<vmem>>, vector<1x1x1000xf32>
    %17 = vector.shape_cast %16 : vector<1x1x1000xf32> to vector<1x1000xf32>
    %18 = arith.subf %1, %7 : vector<1x1000xf32>
    %19 = arith.subf %3, %9 : vector<1x1000xf32>
    %20 = arith.subf %5, %11 : vector<1x1000xf32>
    %21 = arith.mulf %18, %13 : vector<1x1000xf32>
    %22 = arith.mulf %19, %15 : vector<1x1000xf32>
    %23 = arith.addf %21, %22 : vector<1x1000xf32>
    %24 = arith.mulf %20, %17 : vector<1x1000xf32>
    %25 = arith.addf %23, %24 : vector<1x1000xf32>
    %cst = arith.constant 0.000000e+00 : f32
    %26 = vector.broadcast %cst : f32 to vector<1x1000xf32>
    %27 = arith.cmpf olt, %25, %26 : vector<1x1000xf32>
    %28 = arith.mulf %15, %20 : vector<1x1000xf32>
    %29 = arith.mulf %17, %19 : vector<1x1000xf32>
    %30 = arith.subf %28, %29 : vector<1x1000xf32>
    %31 = arith.mulf %17, %18 : vector<1x1000xf32>
    %32 = arith.mulf %13, %20 : vector<1x1000xf32>
    %33 = arith.subf %31, %32 : vector<1x1000xf32>
    %34 = arith.mulf %13, %19 : vector<1x1000xf32>
    %35 = arith.mulf %15, %18 : vector<1x1000xf32>
    %36 = arith.subf %34, %35 : vector<1x1000xf32>
    %37 = arith.mulf %30, %30 : vector<1x1000xf32>
    %38 = arith.mulf %33, %33 : vector<1x1000xf32>
    %39 = arith.addf %37, %38 : vector<1x1000xf32>
    %40 = arith.mulf %36, %36 : vector<1x1000xf32>
    %41 = arith.addf %39, %40 : vector<1x1000xf32>
    %42 = arith.mulf %13, %13 : vector<1x1000xf32>
    %43 = arith.mulf %15, %15 : vector<1x1000xf32>
    %44 = arith.addf %42, %43 : vector<1x1000xf32>
    %45 = arith.mulf %17, %17 : vector<1x1000xf32>
    %46 = arith.addf %44, %45 : vector<1x1000xf32>
    %47 = arith.mulf %18, %46 : vector<1x1000xf32>
    %48 = arith.mulf %13, %25 : vector<1x1000xf32>
    %49 = arith.subf %47, %48 : vector<1x1000xf32>
    %50 = arith.mulf %19, %46 : vector<1x1000xf32>
    %51 = arith.mulf %15, %25 : vector<1x1000xf32>
    %52 = arith.subf %50, %51 : vector<1x1000xf32>
    %53 = arith.mulf %20, %46 : vector<1x1000xf32>
    %54 = arith.mulf %17, %25 : vector<1x1000xf32>
    %55 = arith.subf %53, %54 : vector<1x1000xf32>
    %56 = arith.mulf %41, %46 : vector<1x1000xf32>
    %57 = math.sqrt %56 : vector<1x1000xf32>
    %cst_24 = arith.constant 9.99999971E-10 : f32
    %58 = vector.broadcast %cst_24 : f32 to vector<1x1000xf32>
    %59 = arith.addf %57, %58 : vector<1x1000xf32>
    %60 = tpu.reciprocal %59 {approx = true} : vector<1x1000xf32> -> vector<1x1000xf32>
    %61 = arith.mulf %59, %60 : vector<1x1000xf32>
    %cst_25 = arith.constant 2.000000e+00 : f32
    %62 = vector.broadcast %cst_25 : f32 to vector<1x1000xf32>
    %63 = arith.subf %62, %61 : vector<1x1000xf32>
    %64 = arith.mulf %60, %63 : vector<1x1000xf32>
    %65 = arith.mulf %18, %49 : vector<1x1000xf32>
    %66 = arith.mulf %65, %64 : vector<1x1000xf32>
    %67 = arith.mulf %19, %52 : vector<1x1000xf32>
    %68 = arith.mulf %67, %64 : vector<1x1000xf32>
    %69 = arith.mulf %20, %55 : vector<1x1000xf32>
    %70 = arith.mulf %69, %64 : vector<1x1000xf32>
    %cst_26 = arith.constant 9.99999996E-13 : f32
    %71 = vector.broadcast %cst_26 : f32 to vector<1x1000xf32>
    %72 = arith.cmpf olt, %41, %71 : vector<1x1000xf32>
    %73 = arith.andi %27, %72 : vector<1x1000xi1>
    %cst_27 = arith.constant 0.000000e+00 : f32
    %74 = vector.broadcast %cst_27 : f32 to vector<1x1000xf32>
    %75 = arith.select %73, %74, %66 : vector<1x1000xi1>, vector<1x1000xf32>
    %76 = arith.select %73, %74, %68 : vector<1x1000xi1>, vector<1x1000xf32>
    %77 = arith.select %73, %74, %70 : vector<1x1000xi1>, vector<1x1000xf32>
    %78 = arith.select %27, %75, %18 : vector<1x1000xi1>, vector<1x1000xf32>
    %79 = arith.select %27, %76, %19 : vector<1x1000xi1>, vector<1x1000xf32>
    %80 = arith.select %27, %77, %20 : vector<1x1000xi1>, vector<1x1000xf32>
    %81 = arith.addf %7, %78 : vector<1x1000xf32>
    %82 = arith.addf %9, %79 : vector<1x1000xf32>
    %83 = arith.addf %11, %80 : vector<1x1000xf32>
    %84 = arith.subf %81, %7 : vector<1x1000xf32>
    %cst_28 = arith.constant -5.000000e-02 : f32
    %cst_29 = arith.constant 5.000000e-02 : f32
    %85 = vector.broadcast %cst_28 : f32 to vector<1x1000xf32>
    %86 = arith.maximumf %85, %84 : vector<1x1000xf32>
    %87 = vector.broadcast %cst_29 : f32 to vector<1x1000xf32>
    %88 = arith.minimumf %87, %86 : vector<1x1000xf32>
    %89 = arith.subf %82, %9 : vector<1x1000xf32>
    %cst_30 = arith.constant -5.000000e-02 : f32
    %cst_31 = arith.constant 5.000000e-02 : f32
    %90 = vector.broadcast %cst_30 : f32 to vector<1x1000xf32>
    %91 = arith.maximumf %90, %89 : vector<1x1000xf32>
    %92 = vector.broadcast %cst_31 : f32 to vector<1x1000xf32>
    %93 = arith.minimumf %92, %91 : vector<1x1000xf32>
    %94 = arith.subf %83, %11 : vector<1x1000xf32>
    %cst_32 = arith.constant -5.000000e-02 : f32
    %cst_33 = arith.constant 5.000000e-02 : f32
    %95 = vector.broadcast %cst_32 : f32 to vector<1x1000xf32>
    %96 = arith.maximumf %95, %94 : vector<1x1000xf32>
    %97 = vector.broadcast %cst_33 : f32 to vector<1x1000xf32>
    %98 = arith.minimumf %97, %96 : vector<1x1000xf32>
    %99 = arith.addf %7, %88 : vector<1x1000xf32>
    %100 = arith.addf %9, %93 : vector<1x1000xf32>
    %101 = arith.addf %11, %98 : vector<1x1000xf32>
    %c0_34 = arith.constant 0 : index
    %c0_35 = arith.constant 0 : index
    %c0_36 = arith.constant 0 : index
    %102 = vector.load %arg5[%c0_34, %c0_35, %c0_36] : memref<1x3x1000xf32, #tpu.memory_space<vmem>>, vector<1x1x1000xf32>
    %103 = vector.shape_cast %102 : vector<1x1x1000xf32> to vector<1x1000xf32>
    %104 = vector.shape_cast %99 : vector<1x1000xf32> to vector<1x1x1000xf32>
    tpu.vector_store %arg5[%c0_34, %c0_35, %c0_36], %104 {strides = array<i32>} : memref<1x3x1000xf32, #tpu.memory_space<vmem>>, vector<1x1x1000xf32>,
    %c0_37 = arith.constant 0 : index
    %c1_38 = arith.constant 1 : index
    %c0_39 = arith.constant 0 : index
    %105 = vector.load %arg5[%c0_37, %c1_38, %c0_39] : memref<1x3x1000xf32, #tpu.memory_space<vmem>>, vector<1x1x1000xf32>
    %106 = vector.shape_cast %105 : vector<1x1x1000xf32> to vector<1x1000xf32>
    %107 = vector.shape_cast %100 : vector<1x1000xf32> to vector<1x1x1000xf32>
    tpu.vector_store %arg5[%c0_37, %c1_38, %c0_39], %107 {strides = array<i32>} : memref<1x3x1000xf32, #tpu.memory_space<vmem>>, vector<1x1x1000xf32>,
    %c0_40 = arith.constant 0 : index
    %c2_41 = arith.constant 2 : index
    %c0_42 = arith.constant 0 : index
    %108 = vector.load %arg5[%c0_40, %c2_41, %c0_42] : memref<1x3x1000xf32, #tpu.memory_space<vmem>>, vector<1x1x1000xf32>
    %109 = vector.shape_cast %108 : vector<1x1x1000xf32> to vector<1x1000xf32>
    %110 = vector.shape_cast %101 : vector<1x1000xf32> to vector<1x1x1000xf32>
    tpu.vector_store %arg5[%c0_40, %c2_41, %c0_42], %110 {strides = array<i32>} : memref<1x3x1000xf32, #tpu.memory_space<vmem>>, vector<1x1x1000xf32>,
    return
  }
  func.func @transform_0(%arg0: i32, %arg1: i32) -> (i32, i32, i32) {
    %c0_i32 = arith.constant 0 : i32
    %c0_i32_0 = arith.constant 0 : i32
    return %arg0, %c0_i32, %arg1 : i32, i32, i32
  }
  func.func @transform_1(%arg0: i32, %arg1: i32) -> (i32, i32, i32) {
    %c0_i32 = arith.constant 0 : i32
    %c0_i32_0 = arith.constant 0 : i32
    return %arg0, %c0_i32, %arg1 : i32, i32, i32
  }
  func.func @transform_2(%arg0: i32, %arg1: i32) -> (i32, i32, i32) {
    %c0_i32 = arith.constant 0 : i32
    %c0_i32_0 = arith.constant 0 : i32
    return %arg0, %c0_i32, %arg1 : i32, i32, i32
  }
  func.func @transform_3(%arg0: i32, %arg1: i32) -> (i32, i32, i32) {
    %c0_i32 = arith.constant 0 : i32
    %c0_i32_0 = arith.constant 0 : i32
    return %arg0, %c0_i32, %arg1 : i32, i32, i32
  }
}

</mosaic_0001>

<bundles_post_ra>
// kernel: tpu_custom_call.1
= control target key start
LH: loop header
LB: loop body
LE: loop exit
PB: predicated region body
PF: predicated region fallthrough
CT: control target
= control target key end

     0   :  { %s610_s12 = smov 0   ;;  %s612_s13 = smov 0   ;;  %s701_s0 = inlined_call_operand.vmem [shape: f32[2,3,1000], index: 0, kind: input, shape index: {}]   ;;  %s702_s1 = inlined_call_operand.vmem [shape: f32[2,3,1000], index: 1, kind: input, shape index: {}]   ;;  %s703_s2 = inlined_call_operand.vmem [shape: f32[2,3,1000], index: 2, kind: input, shape index: {}]   ;;  %s704_s3 = inlined_call_operand.vmem [shape: f32[2,3,1000], index: 3, kind: output, shape index: {}]  }
   0x1   :  { %s614_s14 = smov 0  }
   0x2 LB: > { %s25_s15 = sadd.s32 1, %s584_s13  ;;  %p512_p0 = scmp.ge.s32.totalorder %s588_s14, 1  ;;  %s588_s14 = sphi %s614_s14, %s13_s14   ;;  %s584_s13 = sphi %s612_s13, %s706_s13   ;;  %s580_s12 = sphi %s610_s12, %s705_s12  }
   0x3   : > { %p27_p1 = scmp.ge.s32.totalorder %s25_s15, 2  ;;  %p192_p2 = scmp.lt.s32.totalorder %s588_s14, 3 }
   0x5   : > { %s708_s15 = smov (%p27_p1, %s25_s15), 0  ;;  %p193_p3 = pnand %p512_p0, %p192_p2 }
   0x6   : > { %p243_p4 = scmp.lt.s32.totalorder (!%p193_p3), %s580_s12, 1 }
   0x7   : > { %196 = sbr.rel (%p193_p3) target bundleno = 81 (0x51), region = 32 }
   0xe   : > { %s710_s12 = smov (!%p243_p4, %s580_s12), 1 }
   0xf   : > { %s628_s16 = sshll.u32 %s710_s12, 5 }
  0x10   : > { %s250_s19 = scalar_lea.vmem %s701_s0, %s628_s16  ;;  %s260_s22 = scalar_lea.vmem %s702_s1, %s628_s16 }
  0x11   : > { %s270_s25 = scalar_lea.vmem %s703_s2, %s628_s16  ;;  %v282_v0 = vld [vmem:[%s250_s19] ss:$4 sm:$0xff]  ;;  %v521_v1 = vld [vmem:[%s250_s19 + $0x1] ss:$4 sm:$0xff]  ;;  %v522_v2 = vld [vmem:[%s250_s19 + $0x2] ss:$4 sm:$0xff]  ;;  %s280_s28 = scalar_lea.vmem %s704_s3, %s628_s16 }
  0x12   : > { %v642_v3 = vld [vmem:[%s260_s22] ss:$4 sm:$0xff]  ;;  %v644_v4 = vld [vmem:[%s260_s22 + $0x1] ss:$4 sm:$0xff]  ;;  %v646_v5 = vld [vmem:[%s260_s22 + $0x2] ss:$4 sm:$0xff] }
  0x13   : > { %v292_v6 = vld [vmem:[%s270_s25] ss:$4 sm:$0xff]  ;;  %v525_v7 = vld [vmem:[%s270_s25 + $0x1] ss:$4 sm:$0xff]  ;;  %v526_v8 = vld [vmem:[%s270_s25 + $0x2] ss:$4 sm:$0xff]  ;;  %v649_v9 = vsub.f32 %v282_v0, %v642_v3  ;;  %v652_v10 = vsub.f32 %v521_v1, %v644_v4  ;;  %v655_v11 = vsub.f32 %v522_v2, %v646_v5 }
  0x14   : > { %v320_v12 = vmul.f32 %v292_v6, %v292_v6  ;;  %v321_v13 = vmul.f32 %v525_v7, %v525_v7  ;;  %v323_v23 = vmul.f32 %v526_v8, %v526_v8 }
  0x15   : > { %v306_v14 = vmul.f32 %v525_v7, %v655_v11  ;;  %v307_v15 = vmul.f32 %v526_v8, %v652_v10  ;;  %v309_v16 = vmul.f32 %v526_v8, %v649_v9  ;;  %v310_v17 = vmul.f32 %v655_v11, %v292_v6 }
  0x16   : > { %v312_v18 = vmul.f32 %v652_v10, %v292_v6  ;;  %v313_v19 = vmul.f32 %v525_v7, %v649_v9  ;;  %v322_v22 = vadd.f32 %v321_v13, %v320_v12  ;;  %v300_v32 = vmul.f32 %v649_v9, %v292_v6 }
  0x17   : > { %v308_v20 = vsub.f32 %v306_v14, %v307_v15  ;;  %v311_v21 = vsub.f32 %v309_v16, %v310_v17  ;;  %v301_v33 = vmul.f32 %v525_v7, %v652_v10  ;;  %v303_v38 = vmul.f32 %v526_v8, %v655_v11 }
  0x18   : > { %v314_v24 = vsub.f32 %v312_v18, %v313_v19  ;;  %v324_v29 = vadd.f32 %v323_v23, %v322_v22  ;;  %v376_v13 = vlaneseq }
  0x19   : > { %v315_v25 = vmul.f32 %v308_v20, %v308_v20  ;;  %v316_v26 = vmul.f32 %v311_v21, %v311_v21  ;;  %v302_v37 = vadd.f32 %v301_v33, %v300_v32 }
  0x1a   : > { %v318_v27 = vmul.f32 %v314_v24, %v314_v24  ;;  %v325_v43 = vmul.f32 %v324_v29, %v649_v9  ;;  %v328_v47 = vmul.f32 %v324_v29, %v652_v10  ;;  %v331_v48 = vmul.f32 %v324_v29, %v655_v11 }
  0x1b   : > { %v317_v28 = vadd.f32 %v316_v26, %v315_v25  ;;  %v304_v42 = vadd.f32 %v303_v38, %v302_v37  ;;  %vm378_vm5 = vcmp.lt.s32.totalorder %v376_v13, 1000 }
  0x1d   : > { %v319_v30 = vadd.f32 %v318_v27, %v317_v28  ;;  %v326_v44 = vmul.f32 %v304_v42, %v292_v6  ;;  %v329_v45 = vmul.f32 %v525_v7, %v304_v42  ;;  %v332_v46 = vmul.f32 %v526_v8, %v304_v42 }
  0x1e   : > { %vm305_vm2 = vcmp.lt.f32.partialorder %v304_v42, 0.0 }
  0x1f   : > { %v334_v31 = vmul.f32 %v324_v29, %v319_v30  ;;  %v327_v49 = vsub.f32 %v325_v43, %v326_v44  ;;  %v330_v50 = vsub.f32 %v328_v47, %v329_v45  ;;  %v333_v51 = vsub.f32 %v331_v48, %v332_v46 }
  0x20   : > { %vm353_vm3 = vcmp.lt.f32.partialorder %v319_v30, 1e-12 }
  0x21   : > { %562 = vrsqrt.f32 %v334_v31  ;;  %vm337_vm0 = vcmp.eq.f32.partialorder %v334_v31, inf  ;;  %v340_v35 = vand.u32 2147483648, %v334_v31  ;;  %vm339_vm1 = vcmp.eq.f32.partialorder %v334_v31, 0.0  ;;  %vm354_vm4 = vmand %vm305_vm2, %vm353_vm3 }
  0x22   : > { %v347_v54 = vmul.f32 %v327_v49, %v649_v9  ;;  %v349_v56 = vmul.f32 %v330_v50, %v652_v10  ;;  %v351_v57 = vmul.f32 %v333_v51, %v655_v11 }
  0x2b   : > { %v563_v34 = vpop.eup %562 }
  0x2c   : > { %v336_v36 = vmul.f32 %v563_v34, %v334_v31 }
  0x2e   : > { %v338_v39 = vsel %vm337_vm0, %v334_v31, %v336_v36 }
  0x2f   : > { %v341_v40 = vsel %vm339_vm1, %v340_v35, %v338_v39 }
  0x30   : > { %v342_v41 = vadd.f32 1e-09, %v341_v40 }
  0x32   : > { %564 = vrcp.f32 %v342_v41 }
  0x3c   : > { %v565_v52 = vpop.eup %564 }
  0x3d   : > { %v344_v53 = vmul.f32 %v565_v52, %v342_v41 }
  0x3f   : > { %v345_v55 = vsub.f32 2.0, %v344_v53 }
  0x41   : > { %v346_v58 = vmul.f32 %v565_v52, %v345_v55 }
  0x43   : > { %v348_v59 = vmul.f32 %v347_v54, %v346_v58  ;;  %v350_v60 = vmul.f32 %v349_v56, %v346_v58  ;;  %v352_v61 = vmul.f32 %v351_v57, %v346_v58 }
  0x45   : > { %v355_v62 = vsel %vm354_vm4, 0.0, %v348_v59  ;;  %v356_v63 = vsel %vm354_vm4, 0.0, %v350_v60  ;;  %v357_v0 = vsel %vm354_vm4, 0.0, %v352_v61 }
  0x46   : > { %v358_v1 = vsel %vm305_vm2, %v355_v62, %v649_v9  ;;  %v359_v2 = vsel %vm305_vm2, %v356_v63, %v652_v10  ;;  %v360_v6 = vsel %vm305_vm2, %v357_v0, %v655_v11 }
  0x47   : > { %v361_v7 = vadd.f32 %v358_v1, %v642_v3  ;;  %v362_v8 = vadd.f32 %v644_v4, %v359_v2  ;;  %v363_v12 = vadd.f32 %v646_v5, %v360_v6 }
  0x49   : > { %v364_v14 = vsub.f32 %v361_v7, %v642_v3  ;;  %v367_v15 = vsub.f32 %v362_v8, %v644_v4  ;;  %v370_v16 = vsub.f32 %v363_v12, %v646_v5 }
  0x4b   : > { %v527_v9 = vclamps-f32 %v364_v14, 0.05  ;;  %v528_v17 = vclamps-f32 %v367_v15, 0.05  ;;  %v529_v18 = vclamps-f32 %v370_v16, 0.05 }
  0x4d   : > { %v373_v10 = vadd.f32 %v527_v9, %v642_v3  ;;  %v374_v11 = vadd.f32 %v528_v17, %v644_v4  ;;  %v375_v19 = vadd.f32 %v529_v18, %v646_v5 }
  0x4f   : > { %380 = vst.msk [vmem:[%s280_s28] ss:$4 sm:$0xff] %vm378_vm5, %v373_v10  ;;  %530 = vst.msk [vmem:[%s280_s28 + $0x1] ss:$4 sm:$0xff] %vm378_vm5, %v374_v11 }
  0x50   : > { %531 = vst.msk [vmem:[%s280_s28 + $0x2] ss:$4 sm:$0xff] %vm378_vm5, %v375_v19 }
  0x51 PF: > { %s13_s14 = sadd.s32 1, %s588_s14   ;;  %s705_s12 = smov %s584_s13 }
  0x52   : > { %p10_p5 = scmp.ge.s32.totalorder %s13_s14, 4   ;;  %s706_s13 = smov %s708_s15 }
  0x54   :  { %12 = sbr.rel (!%p10_p5) target bundleno = 2 (0x2), region = 76 }

</bundles_post_ra>
